<compile_context>
chip_gen: v7x
topology: tpu7x:2x2x1
jax: 0.10.0
libtpu: 0.0.40
codegen_flags: <defaults>
</compile_context>

<pallas_src>
import functools

import jax
import jax.numpy as jnp
from jax.experimental import pallas as pl
from jax.experimental.pallas import tpu as pltpu


# ----------------------------------------------------------------------------
# Fused kernel: all LSTM layers (recurrence only; input projections hoisted)
# + fc1 + fc2 head.  Single invocation, everything resident in VMEM.
# ----------------------------------------------------------------------------
def fused_lstm_kernel(*refs, num_layers, seq_len, batch, hidden):
    """Ref layout (inputs, output, scratch):

      gin0                 (T, B, 4Hp)   precomputed x @ Wih_0 + b_0, time-major
      whh[0..L-1]          (Hp, 4Hp)
      (wih[l], b[l]) l>=1  (Hp, 4Hp), (1, 4Hp)
      fc1_w (Hp, Hp), fc1_b (1, Hp), fc2_row (1, Hp), fc2_b (1, 1)
      out                  (B, 1)
      gin_sc               (T, B, 4Hp)   VMEM scratch: next layer's input gates
    """
    T, B, Hp = seq_len, batch, hidden
    G = 4 * Hp
    n_in = 1 + num_layers + 2 * (num_layers - 1) + 4
    in_refs = refs[:n_in]
    o_ref = refs[n_in]
    gin_sc = refs[n_in + 1]

    gin0_ref = in_refs[0]
    whh_refs = in_refs[1:1 + num_layers]
    nxt_refs = in_refs[1 + num_layers:1 + num_layers + 2 * (num_layers - 1)]
    w1_ref, b1_ref, w2_ref, b2_ref = in_refs[n_in - 4:]

    def run_layer(gin_ref, whh_ref, wih_next_ref, b_next_ref):
        # Hoist the loop-invariant bias broadcast out of the time loop
        # (JAX does not CSE broadcast_in_dim inside the loop).
        b_next = (jnp.broadcast_to(b_next_ref[...], (B, G))
                  if b_next_ref is not None else None)

        def step(t, carry):
            h, c = carry
            # Input projection was hoisted; only the recurrent matmul sits on
            # the serial path.  Gate order matches PyTorch: i, f, g, o.
            g = gin_ref[t] + jnp.dot(h, whh_ref[...],
                                     preferred_element_type=jnp.float32)
            i_g = jax.nn.sigmoid(g[:, 0 * Hp:1 * Hp])
            f_g = jax.nn.sigmoid(g[:, 1 * Hp:2 * Hp])
            g_g = jnp.tanh(g[:, 2 * Hp:3 * Hp])
            o_g = jax.nn.sigmoid(g[:, 3 * Hp:4 * Hp])
            c_new = f_g * c + i_g * g_g
            h_new = o_g * jnp.tanh(c_new)
            if wih_next_ref is not None:
                # Produce the next layer's input gates on the fly; the
                # inter-layer activations never leave VMEM.
                gin_sc[t] = (jnp.dot(h_new, wih_next_ref[...],
                                     preferred_element_type=jnp.float32)
                             + b_next)
            return h_new, c_new

        h0 = jnp.zeros((B, Hp), jnp.float32)
        c0 = jnp.zeros((B, Hp), jnp.float32)
        h_fin, _ = jax.lax.fori_loop(0, T, step, (h0, c0))
        return h_fin

    h_last = None
    for l in range(num_layers):            # static Python loop over layers
        gin_ref = gin0_ref if l == 0 else gin_sc
        if l + 1 < num_layers:
            wih_next_ref = nxt_refs[2 * l]
            b_next_ref = nxt_refs[2 * l + 1]
        else:
            wih_next_ref = None
            b_next_ref = None
        h_last = run_layer(gin_ref, whh_refs[l], wih_next_ref, b_next_ref)

    # Head: fc1 on the MXU; fc2 (N=1) as VPU multiply + XLU lane reduction so
    # the MXU is not wasted on a 1-column matmul.
    y1 = (jnp.dot(h_last, w1_ref[...], preferred_element_type=jnp.float32)
          + b1_ref[...])
    y2 = jnp.sum(y1 * w2_ref[...], axis=-1, keepdims=True) + b2_ref[...]
    o_ref[...] = y2


# ----------------------------------------------------------------------------
# Wrapper: pad hidden dim to a lane-dense multiple of 128, hoist the layer-0
# input projection, call the fused kernel.
# ----------------------------------------------------------------------------
def _pad_gate_cols(w, H, Hp):
    """(..., 4H) -> (..., 4Hp): zero-pad each of the 4 gate blocks' columns."""
    if Hp == H:
        return w
    lead = w.shape[:-1]
    w4 = w.reshape(lead + (4, H))
    pad = [(0, 0)] * len(lead) + [(0, 0), (0, Hp - H)]
    return jnp.pad(w4, pad).reshape(lead + (4 * Hp,))


def _prep_params(params, H, Hp):
    """Zero-pad all weights so padded hidden units stay exactly zero."""
    layers = []
    for l, layer in enumerate(params["lstm1"]):
        wih = _pad_gate_cols(layer["wih_t"], H, Hp)            # (in_dim, 4Hp)
        if l > 0:
            wih = jnp.pad(wih, ((0, Hp - H), (0, 0)))          # (Hp, 4Hp)
        whh = jnp.pad(_pad_gate_cols(layer["whh_t"], H, Hp),
                      ((0, Hp - H), (0, 0)))                   # (Hp, 4Hp)
        b = _pad_gate_cols(layer["bias"], H, Hp)               # (1, 4Hp)
        layers.append((wih, whh, b))
    fc1_w = jnp.pad(params["fc1_wt"], ((0, Hp - H), (0, Hp - H)))   # (Hp, Hp)
    fc1_b = jnp.pad(params["fc1_b"], ((0, 0), (0, Hp - H)))         # (1, Hp)
    fc2_row = jnp.pad(params["fc2_wt"].T, ((0, 0), (0, Hp - H)))    # (1, Hp)
    fc2_b = params["fc2_b"]                                         # (1, 1)
    return layers, fc1_w, fc1_b, fc2_row, fc2_b


@jax.jit
def lstm_model_forward(x, params):
    """x: (B, T, D) batch_first, matches LSTMModel.forward."""
    B, T, _ = x.shape
    L = len(params["lstm1"])
    H = params["lstm1"][0]["whh_t"].shape[0]
    Hp = ((H + 127) // 128) * 128              # lane-dense padded hidden size

    layers, fc1_w, fc1_b, fc2_row, fc2_b = _prep_params(params, H, Hp)
    wih0, _, b0 = layers[0]

    # Hoisted layer-0 input projection: one MXU-friendly matmul over all T*B
    # rows; the einsum also folds the batch_first -> time-major transpose.
    gin0 = jnp.einsum("btd,dg->tbg", x, wih0) + b0             # (T, B, 4Hp)

    args = [gin0]
    args += [layers[l][1] for l in range(L)]                   # whh per layer
    for l in range(1, L):
        args += [layers[l][0], layers[l][2]]                   # wih_l, b_l
    args += [fc1_w, fc1_b, fc2_row, fc2_b]

    kernel = functools.partial(fused_lstm_kernel, num_layers=L, seq_len=T,
                               batch=B, hidden=Hp)
    return pl.pallas_call(
        kernel,
        out_shape=jax.ShapeDtypeStruct((B, 1), jnp.float32),
        scratch_shapes=[pltpu.VMEM((T, B, 4 * Hp), jnp.float32)],
    )(*args)


# ----------------------------------------------------------------------------
# Deterministic parameter init (PyTorch-style uniform(-1/sqrt(H), 1/sqrt(H))).
# ----------------------------------------------------------------------------
def init_params(key, input_size, hidden_size, num_layers):
    H = hidden_size
    k = 1.0 / jnp.sqrt(jnp.float32(H))
    params = {"lstm1": []}
    in_dim = input_size
    for _ in range(num_layers):
        key, k1, k2, k3, k4 = jax.random.split(key, 5)
        wih = jax.random.uniform(k1, (4 * H, in_dim), jnp.float32, -k, k)
        whh = jax.random.uniform(k2, (4 * H, H), jnp.float32, -k, k)
        bih = jax.random.uniform(k3, (4 * H,), jnp.float32, -k, k)
        bhh = jax.random.uniform(k4, (4 * H,), jnp.float32, -k, k)
        params["lstm1"].append({
            "wih_t": wih.T,                        # (in_dim, 4H)
            "whh_t": whh.T,                        # (H, 4H)
            "bias": (bih + bhh)[None, :],          # (1, 4H)
        })
        in_dim = H
    key, k1, k2, k3, k4 = jax.random.split(key, 5)
    fc1_w = jax.random.uniform(k1, (H, H), jnp.float32, -k, k)
    fc1_b = jax.random.uniform(k2, (H,), jnp.float32, -k, k)
    fc2_w = jax.random.uniform(k3, (1, H), jnp.float32, -k, k)
    fc2_b = jax.random.uniform(k4, (1,), jnp.float32, -k, k)
    params["fc1_wt"] = fc1_w.T                     # (H, H)
    params["fc1_b"] = fc1_b[None, :]               # (1, H)
    params["fc2_wt"] = fc2_w.T                     # (H, 1)
    params["fc2_b"] = fc2_b[None, :]               # (1, 1)
    return params


# ----------------------------------------------------------------------------
# Pure-JAX reference (unpadded), for correctness check.
# ----------------------------------------------------------------------------
def reference_forward(x, params):
    B = x.shape[0]
    h_seq = jnp.transpose(x, (1, 0, 2))
    for layer in params["lstm1"]:
        H = layer["whh_t"].shape[0]
        h = jnp.zeros((B, H), jnp.float32)
        c = jnp.zeros((B, H), jnp.float32)
        outs = []
        for t in range(h_seq.shape[0]):
            g = (h_seq[t] @ layer["wih_t"] + h @ layer["whh_t"]
                 + layer["bias"])
            i_g = jax.nn.sigmoid(g[:, 0 * H:1 * H])
            f_g = jax.nn.sigmoid(g[:, 1 * H:2 * H])
            g_g = jnp.tanh(g[:, 2 * H:3 * H])
            o_g = jax.nn.sigmoid(g[:, 3 * H:4 * H])
            c = f_g * c + i_g * g_g
            h = o_g * jnp.tanh(c)
            outs.append(h)
        h_seq = jnp.stack(outs, axis=0)
    h_last = h_seq[-1]
    y = h_last @ params["fc1_wt"] + params["fc1_b"]
    y = y @ params["fc2_wt"] + params["fc2_b"]
    return y


if __name__ == "__main__":
    B, T = 2, 8
    input_size, hidden_size, num_layers = 4, 32, 2

    key = jax.random.PRNGKey(0)
    key, xkey = jax.random.split(key)
    x = jax.random.normal(xkey, (B, T, input_size), jnp.float32)
    params = init_params(key, input_size, hidden_size, num_layers)

    out = lstm_model_forward(x, params)
    out = jax.block_until_ready(out)

    ref = reference_forward(x, params)
    assert out.shape == (B, 1), out.shape
    assert jnp.allclose(out, ref, atol=1e-4, rtol=1e-4), (out, ref)

    print("KERNEL_OK")
</pallas_src>

<mosaic_0001>
module attributes {stable_mosaic.version = 11 : i64} {
  func.func @fused_lstm_kernel(%arg0: memref<8x2x512xf32, #tpu.memory_space<vmem>>, %arg1: memref<128x512xf32, #tpu.memory_space<vmem>>, %arg2: memref<128x512xf32, #tpu.memory_space<vmem>>, %arg3: memref<128x512xf32, #tpu.memory_space<vmem>>, %arg4: memref<1x512xf32, #tpu.memory_space<vmem>>, %arg5: memref<128x128xf32, #tpu.memory_space<vmem>>, %arg6: memref<1x128xf32, #tpu.memory_space<vmem>>, %arg7: memref<1x128xf32, #tpu.memory_space<vmem>>, %arg8: memref<1x1xf32, #tpu.memory_space<vmem>>, %arg9: memref<2x1xf32, #tpu.memory_space<vmem>>, %arg10: memref<8x2x512xf32, #tpu.memory_space<vmem>>) attributes {dimension_semantics = [], scalar_prefetch = 0 : i64, scratch_operands = 1 : i64, tpu.core_type = #tpu.core_type<tc>} {
    %c0 = arith.constant 0 : index
    %c0_0 = arith.constant 0 : index
    %0 = vector.load %arg4[%c0, %c0_0] : memref<1x512xf32, #tpu.memory_space<vmem>>, vector<1x512xf32>
    %1 = vector.shape_cast %0 : vector<1x512xf32> to vector<1x512xf32>
    %2 = vector.broadcast %1 : vector<1x512xf32> to vector<2x512xf32>
    %cst = arith.constant 0.000000e+00 : f32
    %3 = vector.broadcast %cst : f32 to vector<2x128xf32>
    %cst_1 = arith.constant 0.000000e+00 : f32
    %4 = vector.broadcast %cst_1 : f32 to vector<2x128xf32>
    %c0_i32 = arith.constant 0 : i32
    %c8_i32 = arith.constant 8 : i32
    %5 = arith.addi %c0_i32, %c8_i32 : i32
    %c1_i32 = arith.constant 1 : i32
    %6:2 = scf.for %arg11 = %c0_i32 to %5 step %c1_i32 iter_args(%arg12 = %3, %arg13 = %4) -> (vector<2x128xf32>, vector<2x128xf32>)  : i32 {
      %25 = arith.index_cast %arg11 : i32 to index
      %c0_21 = arith.constant 0 : index
      %c0_22 = arith.constant 0 : index
      %26 = vector.load %arg0[%25, %c0_21, %c0_22] : memref<8x2x512xf32, #tpu.memory_space<vmem>>, vector<1x2x512xf32>
      %27 = vector.shape_cast %26 : vector<1x2x512xf32> to vector<2x512xf32>
      %c0_23 = arith.constant 0 : index
      %c0_24 = arith.constant 0 : index
      %28 = vector.load %arg1[%c0_23, %c0_24] : memref<128x512xf32, #tpu.memory_space<vmem>>, vector<128x512xf32>
      %cst_25 = arith.constant dense<0.000000e+00> : vector<2x512xf32>
      %29 = tpu.matmul %arg12, %28, %cst_25 {dimension_numbers = #tpu.dot_dimension_numbers<[1], [0], [0], [1], [0, 0, 1, 1], [], []>} : vector<2x128xf32>, vector<128x512xf32>, vector<2x512xf32> -> vector<2x512xf32>
      %30 = arith.addf %27, %29 : vector<2x512xf32>
      %31 = vector.extract_strided_slice %30 {offsets = [0, 0], sizes = [2, 128], strides = [1, 1]} : vector<2x512xf32> to vector<2x128xf32>
      %32 = arith.negf %31 : vector<2x128xf32>
      %33 = math.exp %32 : vector<2x128xf32>
      %cst_26 = arith.constant 1.000000e+00 : f32
      %34 = vector.broadcast %cst_26 : f32 to vector<2x128xf32>
      %35 = arith.addf %34, %33 : vector<2x128xf32>
      %36 = arith.divf %34, %35 : vector<2x128xf32>
      %37 = vector.extract_strided_slice %30 {offsets = [0, 128], sizes = [2, 128], strides = [1, 1]} : vector<2x512xf32> to vector<2x128xf32>
      %38 = arith.negf %37 : vector<2x128xf32>
      %39 = math.exp %38 : vector<2x128xf32>
      %cst_27 = arith.constant 1.000000e+00 : f32
      %40 = vector.broadcast %cst_27 : f32 to vector<2x128xf32>
      %41 = arith.addf %40, %39 : vector<2x128xf32>
      %42 = arith.divf %40, %41 : vector<2x128xf32>
      %43 = vector.extract_strided_slice %30 {offsets = [0, 256], sizes = [2, 128], strides = [1, 1]} : vector<2x512xf32> to vector<2x128xf32>
      %44 = math.tanh %43 : vector<2x128xf32>
      %45 = vector.extract_strided_slice %30 {offsets = [0, 384], sizes = [2, 128], strides = [1, 1]} : vector<2x512xf32> to vector<2x128xf32>
      %46 = arith.negf %45 : vector<2x128xf32>
      %47 = math.exp %46 : vector<2x128xf32>
      %cst_28 = arith.constant 1.000000e+00 : f32
      %48 = vector.broadcast %cst_28 : f32 to vector<2x128xf32>
      %49 = arith.addf %48, %47 : vector<2x128xf32>
      %50 = arith.divf %48, %49 : vector<2x128xf32>
      %51 = arith.mulf %42, %arg13 : vector<2x128xf32>
      %52 = arith.mulf %36, %44 : vector<2x128xf32>
      %53 = arith.addf %51, %52 : vector<2x128xf32>
      %54 = math.tanh %53 : vector<2x128xf32>
      %55 = arith.mulf %50, %54 : vector<2x128xf32>
      %c0_29 = arith.constant 0 : index
      %c0_30 = arith.constant 0 : index
      %56 = vector.load %arg3[%c0_29, %c0_30] : memref<128x512xf32, #tpu.memory_space<vmem>>, vector<128x512xf32>
      %cst_31 = arith.constant dense<0.000000e+00> : vector<2x512xf32>
      %57 = tpu.matmul %55, %56, %cst_31 {dimension_numbers = #tpu.dot_dimension_numbers<[1], [0], [0], [1], [0, 0, 1, 1], [], []>} : vector<2x128xf32>, vector<128x512xf32>, vector<2x512xf32> -> vector<2x512xf32>
      %58 = arith.addf %57, %2 : vector<2x512xf32>
      %59 = arith.index_cast %arg11 : i32 to index
      %c0_32 = arith.constant 0 : index
      %c0_33 = arith.constant 0 : index
      %60 = vector.load %arg10[%59, %c0_32, %c0_33] : memref<8x2x512xf32, #tpu.memory_space<vmem>>, vector<1x2x512xf32>
      %61 = vector.shape_cast %60 : vector<1x2x512xf32> to vector<2x512xf32>
      %62 = vector.shape_cast %58 : vector<2x512xf32> to vector<1x2x512xf32>
      tpu.vector_store %arg10[%59, %c0_32, %c0_33], %62 {strides = array<i32>} : memref<8x2x512xf32, #tpu.memory_space<vmem>>, vector<1x2x512xf32>,
      scf.yield %55, %53 : vector<2x128xf32>, vector<2x128xf32>
    }
    %c8_i32_2 = arith.constant 8 : i32
    %cst_3 = arith.constant 0.000000e+00 : f32
    %7 = vector.broadcast %cst_3 : f32 to vector<2x128xf32>
    %cst_4 = arith.constant 0.000000e+00 : f32
    %8 = vector.broadcast %cst_4 : f32 to vector<2x128xf32>
    %c0_i32_5 = arith.constant 0 : i32
    %c8_i32_6 = arith.constant 8 : i32
    %9 = arith.addi %c0_i32_5, %c8_i32_6 : i32
    %c1_i32_7 = arith.constant 1 : i32
    %10:2 = scf.for %arg11 = %c0_i32_5 to %9 step %c1_i32_7 iter_args(%arg12 = %7, %arg13 = %8) -> (vector<2x128xf32>, vector<2x128xf32>)  : i32 {
      %25 = arith.index_cast %arg11 : i32 to index
      %c0_21 = arith.constant 0 : index
      %c0_22 = arith.constant 0 : index
      %26 = vector.load %arg10[%25, %c0_21, %c0_22] : memref<8x2x512xf32, #tpu.memory_space<vmem>>, vector<1x2x512xf32>
      %27 = vector.shape_cast %26 : vector<1x2x512xf32> to vector<2x512xf32>
      %c0_23 = arith.constant 0 : index
      %c0_24 = arith.constant 0 : index
      %28 = vector.load %arg2[%c0_23, %c0_24] : memref<128x512xf32, #tpu.memory_space<vmem>>, vector<128x512xf32>
      %cst_25 = arith.constant dense<0.000000e+00> : vector<2x512xf32>
      %29 = tpu.matmul %arg12, %28, %cst_25 {dimension_numbers = #tpu.dot_dimension_numbers<[1], [0], [0], [1], [0, 0, 1, 1], [], []>} : vector<2x128xf32>, vector<128x512xf32>, vector<2x512xf32> -> vector<2x512xf32>
      %30 = arith.addf %27, %29 : vector<2x512xf32>
      %31 = vector.extract_strided_slice %30 {offsets = [0, 0], sizes = [2, 128], strides = [1, 1]} : vector<2x512xf32> to vector<2x128xf32>
      %32 = arith.negf %31 : vector<2x128xf32>
      %33 = math.exp %32 : vector<2x128xf32>
      %cst_26 = arith.constant 1.000000e+00 : f32
      %34 = vector.broadcast %cst_26 : f32 to vector<2x128xf32>
      %35 = arith.addf %34, %33 : vector<2x128xf32>
      %36 = arith.divf %34, %35 : vector<2x128xf32>
      %37 = vector.extract_strided_slice %30 {offsets = [0, 128], sizes = [2, 128], strides = [1, 1]} : vector<2x512xf32> to vector<2x128xf32>
      %38 = arith.negf %37 : vector<2x128xf32>
      %39 = math.exp %38 : vector<2x128xf32>
      %cst_27 = arith.constant 1.000000e+00 : f32
      %40 = vector.broadcast %cst_27 : f32 to vector<2x128xf32>
      %41 = arith.addf %40, %39 : vector<2x128xf32>
      %42 = arith.divf %40, %41 : vector<2x128xf32>
      %43 = vector.extract_strided_slice %30 {offsets = [0, 256], sizes = [2, 128], strides = [1, 1]} : vector<2x512xf32> to vector<2x128xf32>
      %44 = math.tanh %43 : vector<2x128xf32>
      %45 = vector.extract_strided_slice %30 {offsets = [0, 384], sizes = [2, 128], strides = [1, 1]} : vector<2x512xf32> to vector<2x128xf32>
      %46 = arith.negf %45 : vector<2x128xf32>
      %47 = math.exp %46 : vector<2x128xf32>
      %cst_28 = arith.constant 1.000000e+00 : f32
      %48 = vector.broadcast %cst_28 : f32 to vector<2x128xf32>
      %49 = arith.addf %48, %47 : vector<2x128xf32>
      %50 = arith.divf %48, %49 : vector<2x128xf32>
      %51 = arith.mulf %42, %arg13 : vector<2x128xf32>
      %52 = arith.mulf %36, %44 : vector<2x128xf32>
      %53 = arith.addf %51, %52 : vector<2x128xf32>
      %54 = math.tanh %53 : vector<2x128xf32>
      %55 = arith.mulf %50, %54 : vector<2x128xf32>
      scf.yield %55, %53 : vector<2x128xf32>, vector<2x128xf32>
    }
    %c8_i32_8 = arith.constant 8 : i32
    %c0_9 = arith.constant 0 : index
    %c0_10 = arith.constant 0 : index
    %11 = vector.load %arg5[%c0_9, %c0_10] : memref<128x128xf32, #tpu.memory_space<vmem>>, vector<128x128xf32>
    %cst_11 = arith.constant dense<0.000000e+00> : vector<2x128xf32>
    %12 = tpu.matmul %10#0, %11, %cst_11 {dimension_numbers = #tpu.dot_dimension_numbers<[1], [0], [0], [1], [0, 0, 1, 1], [], []>} : vector<2x128xf32>, vector<128x128xf32>, vector<2x128xf32> -> vector<2x128xf32>
    %c0_12 = arith.constant 0 : index
    %c0_13 = arith.constant 0 : index
    %13 = vector.load %arg6[%c0_12, %c0_13] : memref<1x128xf32, #tpu.memory_space<vmem>>, vector<1x128xf32>
    %14 = vector.broadcast %13 : vector<1x128xf32> to vector<2x128xf32>
    %15 = arith.addf %12, %14 : vector<2x128xf32>
    %c0_14 = arith.constant 0 : index
    %c0_15 = arith.constant 0 : index
    %16 = vector.load %arg7[%c0_14, %c0_15] : memref<1x128xf32, #tpu.memory_space<vmem>>, vector<1x128xf32>
    %17 = vector.broadcast %16 : vector<1x128xf32> to vector<2x128xf32>
    %18 = arith.mulf %15, %17 : vector<2x128xf32>
    %cst_16 = arith.constant dense<0.000000e+00> : vector<2xf32>
    %19 = vector.multi_reduction <add>, %18, %cst_16 [1] : vector<2x128xf32> to vector<2xf32>
    %20 = vector.shape_cast %19 : vector<2xf32> to vector<2x1xf32>
    %c0_17 = arith.constant 0 : index
    %c0_18 = arith.constant 0 : index
    %21 = vector.load %arg8[%c0_17, %c0_18] : memref<1x1xf32, #tpu.memory_space<vmem>>, vector<1x1xf32>
    %22 = vector.broadcast %21 : vector<1x1xf32> to vector<2x1xf32>
    %23 = arith.addf %20, %22 : vector<2x1xf32>
    %c0_19 = arith.constant 0 : index
    %c0_20 = arith.constant 0 : index
    %24 = vector.load %arg9[%c0_19, %c0_20] : memref<2x1xf32, #tpu.memory_space<vmem>>, vector<2x1xf32>
    tpu.vector_store %arg9[%c0_19, %c0_20], %23 {strides = array<i32>} : memref<2x1xf32, #tpu.memory_space<vmem>>, vector<2x1xf32>,
    return
  }
}

</mosaic_0001>

<bundles_post_ra>
// kernel: lstm_model_forward.1
= control target key start
LH: loop header
LB: loop body
LE: loop exit
PB: predicated region body
PF: predicated region fallthrough
CT: control target
= control target key end

     0   :  { %v36_v0 = vlaneseq  ;;  %v1473_v12 = vmov 0.0   ;;  %v1475_v13 = vmov 0.0   ;;  %s2182_s0 = inlined_call_operand.vmem [shape: f32[8,2,512], index: 0, kind: input, shape index: {}]   ;;  %s2183_s1 = inlined_call_operand.vmem [shape: f32[128,512], index: 1, kind: input, shape index: {}]   ;;  %s2184_s2 = inlined_call_operand.vmem [shape: f32[128,512], index: 2, kind: input, shape index: {}]   ;;  %s2185_s3 = inlined_call_operand.vmem [shape: f32[128,512], index: 3, kind: input, shape index: {}]   ;;  %s2186_s4 = inlined_call_operand.vmem [shape: f32[1,512], index: 4, kind: input, shape index: {}]   ;;  %s2187_s5 = inlined_call_operand.vmem [shape: f32[128,128], index: 5, kind: input, shape index: {}]   ;;  %s2188_s6 = inlined_call_operand.vmem [shape: f32[1,128], index: 6, kind: input, shape index: {}]   ;;  %s2189_s7 = inlined_call_operand.vmem [shape: f32[1,128], index: 7, kind: input, shape index: {}]   ;;  %s2190_s8 = inlined_call_operand.<no memory space> [shape: f32[1,1], index: 8, kind: input, shape index: {}]   ;;  %s2191_s9 = inlined_call_operand.vmem [shape: f32[2,1], index: 9, kind: output, shape index: {}]  }
   0x1   :  { %v14_v1 = vstv %s2190_s8  ;;  %v34_v3 = vld [vmem:[%s2186_s4] sm:$0xf]  ;;  %s1477_s4 = smov 0  }
   0x2   :  { %15 = vst [vmem:[#allocation3] sm:$0x1] %v14_v1  ;;  %v1456_v2 = vshrl.u32 %v36_v0, 7 }
   0x4   :  { %v38_v4 = vsub.s32 0, %v1456_v2  ;;  %v42_v5 = vsub.s32 1, %v1456_v2  ;;  %v46_v6 = vsub.s32 2, %v1456_v2  ;;  %v50_v7 = vsub.s32 3, %v1456_v2 }
   0x6   :  { %v1465_v8 = vrot.slane %v34_v3, %v38_v4  ;;  %v1467_v9 = vrot.slane %v34_v3, %v42_v5  ;;  %v1469_v10 = vrot.slane %v34_v3, %v46_v6  ;;  %v1471_v11 = vrot.slane %v34_v3, %v50_v7 }
   0x7 LB: > { %v69_v14 = vld [vmem:[%s2183_s1 + $0x8] sm:$0xff]  ;;  %v71_v16 = vld [vmem:[%s2183_s1 + $0x18] sm:$0xff]  ;;  %v68_v19 = vld [vmem:[%s2183_s1] sm:$0xff]  ;;  %v1397_v21 = vmov 0.0   ;;  %s992_s26 = sshll.u32 %s1383_s4, 3  ;;  %s61_s4 = sadd.s32 1, %s1383_s4   ;;  %s1383_s4 = sphi %s1477_s4, %s61_s4   ;;  %v1379_v13 = vphi %v1475_v13, %v327_v13   ;;  %v1375_v12 = vphi %v1473_v12, %v325_v12  }
   0x8   : > { %v73_v15 = vld [vmem:[%s2183_s1 + $0x28] sm:$0xff]  ;;  %v75_v18 = vld [vmem:[%s2183_s1 + $0x38] sm:$0xff]  ;;  %v72_v20 = vld [vmem:[%s2183_s1 + $0x20] sm:$0xff]  ;;  %196 = vmatprep.mubr.f32.mxu0 %v1397_v21  ;;  %267 = vmatprep.mubr.f32.mxu1 %v1397_v21  ;;  %s66_s29 = scalar_lea.vmem %s2182_s0, %s992_s26  ;;  %s557_s30 = scalar_lea.vmem [#allocation2], %s992_s26 }
   0x9   : > { %v1047_v17 = vpack.c.bf16 %v73_v15, %v69_v14  ;;  %v1079_v22 = vpack.c.bf16 %v75_v18, %v71_v16  ;;  %v1049_v23 = vpack.c.bf16 %v72_v20, %v68_v19  ;;  %v70_v24 = vld [vmem:[%s2183_s1 + $0x10] sm:$0xff]  ;;  %v77_v26 = vld [vmem:[%s2183_s1 + $0x48] sm:$0xff]  ;;  %v79_v29 = vld [vmem:[%s2183_s1 + $0x58] sm:$0xff]  ;;  %p58_p0 = scmp.ge.s32.totalorder %s61_s4, 8  }
   0xa   : > { %v74_v25 = vld [vmem:[%s2183_s1 + $0x30] sm:$0xff]  ;;  %v81_v28 = vld [vmem:[%s2183_s1 + $0x68] sm:$0xff]  ;;  %v83_v30 = vld [vmem:[%s2183_s1 + $0x78] sm:$0xff]  ;;  %s1909_s10 = smov (%p58_p0), 0  }
   0xb   : > { %1048 = vmatprep.subr.bf16.mxu0 %v1047_v17  ;;  %v1081_v27 = vpack.c.bf16 %v74_v25, %v70_v24  ;;  %1080 = vmatprep.subr.bf16.mxu1 %v1079_v22  ;;  %v1051_v31 = vpack.c.bf16 %v81_v28, %v77_v26  ;;  %v1083_v32 = vpack.c.bf16 %v83_v30, %v79_v29  ;;  %v76_v33 = vld [vmem:[%s2183_s1 + $0x40] sm:$0xff]  ;;  %v78_v35 = vld [vmem:[%s2183_s1 + $0x50] sm:$0xff]  ;;  %v85_v38 = vld [vmem:[%s2183_s1 + $0x88] sm:$0xff] }
   0xc   : > { %1050 = vmatpush1.bf16.msra.mxu0 %v1049_v23  ;;  %v80_v34 = vld [vmem:[%s2183_s1 + $0x60] sm:$0xff]  ;;  %v82_v37 = vld [vmem:[%s2183_s1 + $0x70] sm:$0xff]  ;;  %v89_v39 = vld [vmem:[%s2183_s1 + $0xa8] sm:$0xff] }
   0xd   : > { %1082 = vmatpush1.bf16.msra.mxu1 %v1081_v27  ;;  %v1053_v36 = vpack.c.bf16 %v80_v34, %v76_v33  ;;  %1052 = vmatprep.subr.bf16.mxu0 %v1051_v31  ;;  %v1085_v40 = vpack.c.bf16 %v82_v37, %v78_v35  ;;  %v1055_v41 = vpack.c.bf16 %v89_v39, %v85_v38  ;;  %v87_v42 = vld [vmem:[%s2183_s1 + $0x98] sm:$0xff]  ;;  %v84_v44 = vld [vmem:[%s2183_s1 + $0x80] sm:$0xff]  ;;  %v86_v47 = vld [vmem:[%s2183_s1 + $0x90] sm:$0xff] }
   0xe   : > { %1084 = vmatprep.subr.bf16.mxu1 %v1083_v32  ;;  %v91_v43 = vld [vmem:[%s2183_s1 + $0xb8] sm:$0xff]  ;;  %v88_v46 = vld [vmem:[%s2183_s1 + $0xa0] sm:$0xff]  ;;  %v90_v48 = vld [vmem:[%s2183_s1 + $0xb0] sm:$0xff] }
   0xf   : > { %v1087_v45 = vpack.c.bf16 %v91_v43, %v87_v42  ;;  %v1057_v49 = vpack.c.bf16 %v88_v46, %v84_v44  ;;  %v93_v50 = vld [vmem:[%s2183_s1 + $0xc8] sm:$0xff]  ;;  %v95_v52 = vld [vmem:[%s2183_s1 + $0xd8] sm:$0xff]  ;;  %v1089_v53 = vpack.c.bf16 %v90_v48, %v86_v47  ;;  %v92_v56 = vld [vmem:[%s2183_s1 + $0xc0] sm:$0xff] }
  0x10   : > { %1054 = vmatpush1.bf16.msra.mxu0 %v1053_v36  ;;  %v97_v51 = vld [vmem:[%s2183_s1 + $0xe8] sm:$0xff]  ;;  %v99_v55 = vld [vmem:[%s2183_s1 + $0xf8] sm:$0xff]  ;;  %v96_v57 = vld [vmem:[%s2183_s1 + $0xe0] sm:$0xff] }
  0x11   : > { %1086 = vmatpush1.bf16.msra.mxu1 %v1085_v40  ;;  %1056 = vmatprep.subr.bf16.mxu0 %v1055_v41  ;;  %v1059_v54 = vpack.c.bf16 %v97_v51, %v93_v50  ;;  %v1091_v58 = vpack.c.bf16 %v99_v55, %v95_v52  ;;  %v94_v59 = vld [vmem:[%s2183_s1 + $0xd0] sm:$0xff]  ;;  %v101_v61 = vld [vmem:[%s2183_s1 + $0x108] sm:$0xff]  ;;  %v103_v63 = vld [vmem:[%s2183_s1 + $0x118] sm:$0xff]  ;;  %v1061_v1 = vpack.c.bf16 %v96_v57, %v92_v56 }
  0x12   : > { %1088 = vmatprep.subr.bf16.mxu1 %v1087_v45  ;;  %v98_v60 = vld [vmem:[%s2183_s1 + $0xf0] sm:$0xff]  ;;  %v105_v62 = vld [vmem:[%s2183_s1 + $0x128] sm:$0xff]  ;;  %v107_v0 = vld [vmem:[%s2183_s1 + $0x138] sm:$0xff] }
  0x13   : > { %v1093_v3 = vpack.c.bf16 %v98_v60, %v94_v59  ;;  %v1063_v4 = vpack.c.bf16 %v105_v62, %v101_v61  ;;  %v100_v5 = vld [vmem:[%s2183_s1 + $0x100] sm:$0xff]  ;;  %v102_v7 = vld [vmem:[%s2183_s1 + $0x110] sm:$0xff]  ;;  %v1095_v14 = vpack.c.bf16 %v107_v0, %v103_v63  ;;  %v109_v16 = vld [vmem:[%s2183_s1 + $0x148] sm:$0xff] }
  0x14   : > { %1058 = vmatpush1.bf16.msra.mxu0 %v1057_v49  ;;  %v104_v6 = vld [vmem:[%s2183_s1 + $0x120] sm:$0xff]  ;;  %v106_v15 = vld [vmem:[%s2183_s1 + $0x130] sm:$0xff]  ;;  %v113_v17 = vld [vmem:[%s2183_s1 + $0x168] sm:$0xff] }
  0x15   : > { %1090 = vmatpush1.bf16.msra.mxu1 %v1089_v53  ;;  %1060 = vmatprep.subr.bf16.mxu0 %v1059_v54  ;;  %v111_v18 = vld [vmem:[%s2183_s1 + $0x158] sm:$0xff]  ;;  %v1065_v20 = vpack.c.bf16 %v104_v6, %v100_v5  ;;  %v1097_v22 = vpack.c.bf16 %v106_v15, %v102_v7  ;;  %v1067_v23 = vpack.c.bf16 %v113_v17, %v109_v16  ;;  %v108_v24 = vld [vmem:[%s2183_s1 + $0x140] sm:$0xff]  ;;  %v110_v26 = vld [vmem:[%s2183_s1 + $0x150] sm:$0xff] }
  0x16   : > { %1092 = vmatprep.subr.bf16.mxu1 %v1091_v58  ;;  %v115_v19 = vld [vmem:[%s2183_s1 + $0x178] sm:$0xff]  ;;  %v112_v25 = vld [vmem:[%s2183_s1 + $0x160] sm:$0xff]  ;;  %v114_v28 = vld [vmem:[%s2183_s1 + $0x170] sm:$0xff] }
  0x17   : > { %v1099_v27 = vpack.c.bf16 %v115_v19, %v111_v18  ;;  %v117_v29 = vld [vmem:[%s2183_s1 + $0x188] sm:$0xff]  ;;  %v119_v31 = vld [vmem:[%s2183_s1 + $0x198] sm:$0xff]  ;;  %v1069_v33 = vpack.c.bf16 %v112_v25, %v108_v24  ;;  %v1101_v34 = vpack.c.bf16 %v114_v28, %v110_v26  ;;  %v116_v36 = vld [vmem:[%s2183_s1 + $0x180] sm:$0xff] }
  0x18   : > { %1062 = vmatpush1.bf16.msra.mxu0 %v1061_v1  ;;  %v121_v30 = vld [vmem:[%s2183_s1 + $0x1a8] sm:$0xff]  ;;  %v123_v32 = vld [vmem:[%s2183_s1 + $0x1b8] sm:$0xff]  ;;  %v120_v37 = vld [vmem:[%s2183_s1 + $0x1a0] sm:$0xff] }
  0x19   : > { %1094 = vmatpush1.bf16.msra.mxu1 %v1093_v3  ;;  %1064 = vmatprep.subr.bf16.mxu0 %v1063_v4  ;;  %v1071_v35 = vpack.c.bf16 %v121_v30, %v117_v29  ;;  %v118_v38 = vld [vmem:[%s2183_s1 + $0x190] sm:$0xff]  ;;  %v1103_v39 = vpack.c.bf16 %v123_v32, %v119_v31  ;;  %v125_v41 = vld [vmem:[%s2183_s1 + $0x1c8] sm:$0xff]  ;;  %v127_v43 = vld [vmem:[%s2183_s1 + $0x1d8] sm:$0xff]  ;;  %v1073_v45 = vpack.c.bf16 %v120_v37, %v116_v36 }
  0x1a   : > { %1096 = vmatprep.subr.bf16.mxu1 %v1095_v14  ;;  %v122_v40 = vld [vmem:[%s2183_s1 + $0x1b0] sm:$0xff]  ;;  %v129_v42 = vld [vmem:[%s2183_s1 + $0x1e8] sm:$0xff]  ;;  %v131_v44 = vld [vmem:[%s2183_s1 + $0x1f8] sm:$0xff] }
  0x1b   : > { %v1105_v46 = vpack.c.bf16 %v122_v40, %v118_v38  ;;  %v1075_v47 = vpack.c.bf16 %v129_v42, %v125_v41  ;;  %v124_v48 = vld [vmem:[%s2183_s1 + $0x1c0] sm:$0xff]  ;;  %v1107_v50 = vpack.c.bf16 %v131_v44, %v127_v43  ;;  %v126_v51 = vld [vmem:[%s2183_s1 + $0x1d0] sm:$0xff]  ;;  %v329_v55 = vld [vmem:[%s2185_s3 + $0x8] sm:$0xff] }
  0x1c   : > { %1066 = vmatpush1.bf16.msra.mxu0 %v1065_v20  ;;  %v128_v49 = vld [vmem:[%s2183_s1 + $0x1e0] sm:$0xff]  ;;  %v130_v52 = vld [vmem:[%s2183_s1 + $0x1f0] sm:$0xff]  ;;  %v333_v56 = vld [vmem:[%s2185_s3 + $0x28] sm:$0xff] }
  0x1d   : > { %1098 = vmatpush1.bf16.msra.mxu1 %v1097_v22  ;;  %1068 = vmatprep.subr.bf16.mxu0 %v1067_v23  ;;  %v1077_v53 = vpack.c.bf16 %v128_v49, %v124_v48  ;;  %v1109_v54 = vpack.c.bf16 %v130_v52, %v126_v51  ;;  %v331_v57 = vld [vmem:[%s2185_s3 + $0x18] sm:$0xff]  ;;  %v1111_v58 = vpack.c.bf16 %v333_v56, %v329_v55  ;;  %v332_v59 = vld [vmem:[%s2185_s3 + $0x20] sm:$0xff]  ;;  %v330_v62 = vld [vmem:[%s2185_s3 + $0x10] sm:$0xff] }
  0x1e   : > { %1100 = vmatprep.subr.bf16.mxu1 %v1099_v27  ;;  %v334_v63 = vld [vmem:[%s2185_s3 + $0x30] sm:$0xff]  ;;  %v337_v1 = vld [vmem:[%s2185_s3 + $0x48] sm:$0xff]  ;;  %v339_v4 = vld [vmem:[%s2185_s3 + $0x58] sm:$0xff] }
  0x1f   : > { %v1145_v0 = vpack.c.bf16 %v334_v63, %v330_v62  ;;  %v341_v3 = vld [vmem:[%s2185_s3 + $0x68] sm:$0xff]  ;;  %v343_v6 = vld [vmem:[%s2185_s3 + $0x78] sm:$0xff]  ;;  %v336_v7 = vld [vmem:[%s2185_s3 + $0x40] sm:$0xff] }
  0x20   : > { %1070 = vmatpush1.bf16.msra.mxu0 %v1069_v33  ;;  %v1115_v5 = vpack.c.bf16 %v341_v3, %v337_v1  ;;  %v340_v14 = vld [vmem:[%s2185_s3 + $0x60] sm:$0xff]  ;;  %v1147_v15 = vpack.c.bf16 %v343_v6, %v339_v4  ;;  %v338_v17 = vld [vmem:[%s2185_s3 + $0x50] sm:$0xff]  ;;  %v345_v19 = vld [vmem:[%s2185_s3 + $0x88] sm:$0xff] }
  0x21   : > { %1102 = vmatpush1.bf16.msra.mxu1 %v1101_v34  ;;  %1072 = vmatprep.subr.bf16.mxu0 %v1071_v35  ;;  %v1117_v16 = vpack.c.bf16 %v340_v14, %v336_v7  ;;  %v342_v18 = vld [vmem:[%s2185_s3 + $0x70] sm:$0xff]  ;;  %v349_v22 = vld [vmem:[%s2185_s3 + $0xa8] sm:$0xff]  ;;  %v347_v23 = vld [vmem:[%s2185_s3 + $0x98] sm:$0xff] }
  0x22   : > { %1104 = vmatprep.subr.bf16.mxu1 %v1103_v39  ;;  %v1149_v20 = vpack.c.bf16 %v342_v18, %v338_v17  ;;  %v351_v24 = vld [vmem:[%s2185_s3 + $0xb8] sm:$0xff]  ;;  %v1119_v25 = vpack.c.bf16 %v349_v22, %v345_v19  ;;  %v344_v27 = vld [vmem:[%s2185_s3 + $0x80] sm:$0xff]  ;;  %v346_v29 = vld [vmem:[%s2185_s3 + $0x90] sm:$0xff] }
  0x23   : > { %v1151_v26 = vpack.c.bf16 %v351_v24, %v347_v23  ;;  %v348_v28 = vld [vmem:[%s2185_s3 + $0xa0] sm:$0xff]  ;;  %v350_v31 = vld [vmem:[%s2185_s3 + $0xb0] sm:$0xff]  ;;  %v353_v32 = vld [vmem:[%s2185_s3 + $0xc8] sm:$0xff] }
  0x24   : > { %1074 = vmatpush1.bf16.msra.mxu0 %v1073_v45  ;;  %v1121_v30 = vpack.c.bf16 %v348_v28, %v344_v27  ;;  %v357_v33 = vld [vmem:[%s2185_s3 + $0xe8] sm:$0xff]  ;;  %v1153_v34 = vpack.c.bf16 %v350_v31, %v346_v29  ;;  %v355_v36 = vld [vmem:[%s2185_s3 + $0xd8] sm:$0xff]  ;;  %v352_v38 = vld [vmem:[%s2185_s3 + $0xc0] sm:$0xff] }
  0x25   : > { %1106 = vmatpush1.bf16.msra.mxu1 %v1105_v46  ;;  %1076 = vmatprep.subr.bf16.mxu0 %v1075_v47  ;;  %v1123_v35 = vpack.c.bf16 %v357_v33, %v353_v32  ;;  %v359_v37 = vld [vmem:[%s2185_s3 + $0xf8] sm:$0xff]  ;;  %v356_v40 = vld [vmem:[%s2185_s3 + $0xe0] sm:$0xff]  ;;  %v354_v41 = vld [vmem:[%s2185_s3 + $0xd0] sm:$0xff] }
  0x26   : > { %1108 = vmatprep.subr.bf16.mxu1 %v1107_v50  ;;  %v1155_v39 = vpack.c.bf16 %v359_v37, %v355_v36  ;;  %v358_v42 = vld [vmem:[%s2185_s3 + $0xf0] sm:$0xff]  ;;  %v1125_v43 = vpack.c.bf16 %v356_v40, %v352_v38  ;;  %v361_v44 = vld [vmem:[%s2185_s3 + $0x108] sm:$0xff]  ;;  %v363_v46 = vld [vmem:[%s2185_s3 + $0x118] sm:$0xff] }
  0x27   : > { %v365_v45 = vld [vmem:[%s2185_s3 + $0x128] sm:$0xff]  ;;  %v1157_v47 = vpack.c.bf16 %v358_v42, %v354_v41  ;;  %v367_v49 = vld [vmem:[%s2185_s3 + $0x138] sm:$0xff]  ;;  %v360_v50 = vld [vmem:[%s2185_s3 + $0x100] sm:$0xff] }
  0x28   : > { %1078 = vmatpush1.bf16.msra.mxu0 %v1077_v53  ;;  %v1127_v48 = vpack.c.bf16 %v365_v45, %v361_v44  ;;  %v364_v51 = vld [vmem:[%s2185_s3 + $0x120] sm:$0xff]  ;;  %v1159_v52 = vpack.c.bf16 %v367_v49, %v363_v46  ;;  %v362_v53 = vld [vmem:[%s2185_s3 + $0x110] sm:$0xff]  ;;  %v369_v55 = vld [vmem:[%s2185_s3 + $0x148] sm:$0xff] }
  0x29   : > { %1110 = vmatpush1.bf16.msra.mxu1 %v1109_v54  ;;  %1112 = vmatprep.subr.bf16.mxu0 %v1111_v58  ;;  %v366_v54 = vld [vmem:[%s2185_s3 + $0x130] sm:$0xff]  ;;  %v373_v56 = vld [vmem:[%s2185_s3 + $0x168] sm:$0xff]  ;;  %v375_v58 = vld [vmem:[%s2185_s3 + $0x178] sm:$0xff] }
  0x2a   : > { %v370_v62 = vld [vmem:[%s2185_s3 + $0x150] sm:$0xff]  ;;  %v377_v1 = vld [vmem:[%s2185_s3 + $0x188] sm:$0xff]  ;;  %v379_v4 = vld [vmem:[%s2185_s3 + $0x198] sm:$0xff] }
  0x2b   : > { %197 = vmatmul.mubr.f32.vlgmr.msra.gmra.mrb[0].mxu0 %v1379_v13  ;;  %v381_v3 = vld [vmem:[%s2185_s3 + $0x1a8] sm:$0xff]  ;;  %v378_v17 = vld [vmem:[%s2185_s3 + $0x190] sm:$0xff]  ;;  %v387_v23 = vld [vmem:[%s2185_s3 + $0x1d8] sm:$0xff] }
  0x2c   : > { %268 = vmatmul.mubr.f32.vlgmr.msra.gmra.mrb[0].mxu1 %v1379_v13  ;;  %456 = vmatprep.mubr.f32.mxu0 %v1397_v21  ;;  %v335_v13 = vld [vmem:[%s2185_s3 + $0x38] sm:$0xff]  ;;  %v1135_v14 = vpack.c.bf16 %v381_v3, %v377_v1  ;;  %v382_v19 = vld [vmem:[%s2185_s3 + $0x1b0] sm:$0xff]  ;;  %v389_v22 = vld [vmem:[%s2185_s3 + $0x1e8] sm:$0xff] }
  0x2d   : > { %527 = vmatprep.mubr.f32.mxu1 %v1397_v21  ;;  %v328_v21 = vld [vmem:[%s2185_s3] sm:$0xff]  ;;  %v1143_v60 = vpack.c.bf16 %v335_v13, %v331_v57  ;;  %v371_v57 = vld [vmem:[%s2185_s3 + $0x158] sm:$0xff]  ;;  %v1129_v13 = vpack.c.bf16 %v364_v51, %v360_v50  ;;  %v386_v31 = vld [vmem:[%s2185_s3 + $0x1d0] sm:$0xff] }
  0x2e   : > { %v1113_v61 = vpack.c.bf16 %v332_v59, %v328_v21  ;;  %v1161_v21 = vpack.c.bf16 %v366_v54, %v362_v53  ;;  %v1131_v59 = vpack.c.bf16 %v373_v56, %v369_v55  ;;  %v1163_v63 = vpack.c.bf16 %v375_v58, %v371_v57  ;;  %v391_v24 = vld [vmem:[%s2185_s3 + $0x1f8] sm:$0xff]  ;;  %v384_v28 = vld [vmem:[%s2185_s3 + $0x1c0] sm:$0xff]  ;;  %v390_v32 = vld [vmem:[%s2185_s3 + $0x1f0] sm:$0xff] }
  0x2f   : > { %1144 = vmatprep.subr.bf16.mxu1 %v1143_v60  ;;  %v368_v60 = vld [vmem:[%s2185_s3 + $0x140] sm:$0xff] }
  0x30   : > { %1114 = vmatpush1.bf16.msra.mxu0 %v1113_v61  ;;  %1146 = vmatpush1.bf16.msra.mxu1 %v1145_v0  ;;  %v372_v61 = vld [vmem:[%s2185_s3 + $0x160] sm:$0xff]  ;;  %v374_v0 = vld [vmem:[%s2185_s3 + $0x170] sm:$0xff] }
  0x31   : > { %1116 = vmatprep.subr.bf16.mxu0 %v1115_v5  ;;  %1148 = vmatprep.subr.bf16.mxu1 %v1147_v15  ;;  %v383_v5 = vld [vmem:[%s2185_s3 + $0x1b8] sm:$0xff]  ;;  %v1133_v6 = vpack.c.bf16 %v372_v61, %v368_v60  ;;  %v1165_v7 = vpack.c.bf16 %v374_v0, %v370_v62  ;;  %v376_v15 = vld [vmem:[%s2185_s3 + $0x180] sm:$0xff] }
  0x32   : > { %v1167_v18 = vpack.c.bf16 %v383_v5, %v379_v4  ;;  %v388_v29 = vld [vmem:[%s2185_s3 + $0x1e0] sm:$0xff] }
  0x33   : > { %v1141_v33 = vpack.c.bf16 %v388_v29, %v384_v28 }
  0x34   : > { %1118 = vmatpush1.bf16.msra.mxu0 %v1117_v16  ;;  %1150 = vmatpush1.bf16.msra.mxu1 %v1149_v20  ;;  %v380_v16 = vld [vmem:[%s2185_s3 + $0x1a0] sm:$0xff]  ;;  %v385_v20 = vld [vmem:[%s2185_s3 + $0x1c8] sm:$0xff] }
  0x35   : > { %1120 = vmatprep.subr.bf16.mxu0 %v1119_v25  ;;  %1152 = vmatprep.subr.bf16.mxu1 %v1151_v26  ;;  %v1137_v25 = vpack.c.bf16 %v380_v16, %v376_v15  ;;  %v1169_v26 = vpack.c.bf16 %v382_v19, %v378_v17  ;;  %v1139_v27 = vpack.c.bf16 %v389_v22, %v385_v20 }
  0x38   : > { %1122 = vmatpush1.bf16.msra.mxu0 %v1121_v30  ;;  %1154 = vmatpush1.bf16.msra.mxu1 %v1153_v34  ;;  %v1171_v30 = vpack.c.bf16 %v391_v24, %v387_v23  ;;  %v1173_v34 = vpack.c.bf16 %v390_v32, %v386_v31  ;;  %v1905_v24 = vmov (%p58_p0), 0.0  }
  0x39   : > { %1124 = vmatprep.subr.bf16.mxu0 %v1123_v35  ;;  %1156 = vmatprep.subr.bf16.mxu1 %v1155_v39  ;;  %v1398_v35 = vmov 1983009808  }
  0x3a   : > { %v281_v36 = vunpack.c.l.s4 %v1398_v35 }
  0x3c   : > { %1126 = vmatpush1.bf16.msra.mxu0 %v1125_v43  ;;  %1158 = vmatpush1.bf16.msra.mxu1 %v1157_v47  ;;  %v282_v37 = vunpack.c.0.s8 %v281_v36  ;;  %v67_v47 = vld [vmem:[%s66_s29] sm:$0xff] }
  0x3d   : > { %1128 = vmatprep.subr.bf16.mxu0 %v1127_v48  ;;  %1160 = vmatprep.subr.bf16.mxu1 %v1159_v52 }
  0x3e   : > { %v1879_v39 = vsub.s32 %v282_v37, %v1456_v2 }
  0x40   : > { %1130 = vmatpush1.bf16.msra.mxu0 %v1129_v13  ;;  %1162 = vmatpush1.bf16.msra.mxu1 %v1161_v21 }
  0x41   : > { %1132 = vmatprep.subr.bf16.mxu0 %v1131_v59  ;;  %1164 = vmatprep.subr.bf16.mxu1 %v1163_v63 }
  0x44   : > { %1134 = vmatpush1.bf16.msra.mxu0 %v1133_v6  ;;  %1166 = vmatpush1.bf16.msra.mxu1 %v1165_v7 }
  0x45   : > { %1136 = vmatprep.subr.bf16.mxu0 %v1135_v14  ;;  %1168 = vmatprep.subr.bf16.mxu1 %v1167_v18 }
  0x48   : > { %1138 = vmatpush1.bf16.msra.mxu0 %v1137_v25  ;;  %1170 = vmatpush1.bf16.msra.mxu1 %v1169_v26  ;;  %v1907_v25 = vmov (%p58_p0), 0.0  }
  0x49   : > { %1140 = vmatprep.subr.bf16.mxu0 %v1139_v27  ;;  %1172 = vmatprep.subr.bf16.mxu1 %v1171_v30 }
  0x4c   : > { %1142 = vmatpush1.bf16.msra.mxu0 %v1141_v33  ;;  %1174 = vmatpush1.bf16.msra.mxu1 %v1173_v34 }
  0xfe   : > { %v198_v38 = vpop.f32.mrb[0].mxu0 }
  0xff   : > { %v269_v40 = vpop.f32.mrb[0].mxu1  ;;  %v200_v41 = vpop.f32.mrb[1].mxu0 }
 0x100   : > { %v278_v42 = vcombine.low %v198_v38, %v200_v41  ;;  %v271_v43 = vpop.f32.mrb[1].mxu1 }
 0x101   : > { %v279_v44 = vcombine.low %v269_v40, %v271_v43 }
 0x102   : > { %v286_v45 = vrot.slane %v278_v42, %v1879_v39 }
 0x103   : > { %v293_v46 = vrot.slane %v279_v44, %v1879_v39 }
 0x105   : > { %v294_v48 = vcombine.low %v286_v45, %v293_v46 }
 0x107   : > { %v296_v49 = vadd.f32 %v294_v48, %v67_v47 }
 0x109   : > { %v980_v50 = vmul.f32 -1.442695, %v296_v49  ;;  %v304_v51 = vrot.slane %v296_v49, 2  ;;  %v315_v53 = vrot.slane %v296_v49, 6  ;;  %v312_v56 = vrot.slane %v296_v49, 4 }
 0x10b   : > { %1317 = vpow2.f32 %v980_v50  ;;  %v981_v52 = vmul.f32 -1.442695, %v304_v51  ;;  %v982_v54 = vmul.f32 -1.442695, %v315_v53 }
 0x10d   : > { %1319 = vpow2.f32 %v981_v52 }
 0x10e   : > { %1321 = vpow2.f32 %v982_v54 }
 0x115   : > { %v1318_v55 = vpop.eup %1317 }
 0x116   : > { %v300_v57 = vadd.f32 1.0, %v1318_v55 }
 0x117   : > { %v1320_v58 = vpop.eup %1319 }
 0x118   : > { %1323 = vrcp.f32 %v300_v57  ;;  %v309_v13 = vadd.f32 1.0, %v1320_v58  ;;  %v1322_v21 = vpop.eup %1321 }
 0x119   : > { %1325 = vtanh.f32 %v312_v56  ;;  %v320_v62 = vadd.f32 1.0, %v1322_v21 }
 0x11a   : > { %1327 = vrcp.f32 %v309_v13 }
 0x11b   : > { %1329 = vrcp.f32 %v320_v62 }
 0x122   : > { %v1324_v59 = vpop.eup %1323 }
 0x123   : > { %v1326_v60 = vpop.eup %1325 }
 0x124   : > { %v1328_v61 = vpop.eup %1327  ;;  %v324_v0 = vmul.f32 %v1326_v60, %v1324_v59 }
 0x125   : > { %v323_v63 = vmul.f32 %v1375_v12, %v1328_v61  ;;  %v1330_v1 = vpop.eup %1329 }
 0x127   : > { %v325_v12 = vadd.f32 %v324_v0, %v323_v63  }
 0x129   : > { %1331 = vtanh.f32 %v325_v12 }
 0x133   : > { %v1332_v3 = vpop.eup %1331 }
 0x134   : > { %v327_v13 = vmul.f32 %v1332_v3, %v1330_v1  }
 0x136   : > { %457 = vmatmul.mubr.f32.vlgmr.msra.gmra.mrb[2].mxu0 %v327_v13  ;;  %528 = vmatmul.mubr.f32.vlgmr.msra.gmra.mrb[2].mxu1 %v327_v13 }
 0x209   : > { %v458_v4 = vpop.f32.mrb[2].mxu0  ;;  %v529_v5 = vpop.f32.mrb[2].mxu1 }
 0x20a   : > { %v459_v6 = vadd.f32 %v458_v4, %v1465_v8  ;;  %v530_v7 = vadd.f32 %v529_v5, %v1469_v10  ;;  %v460_v14 = vpop.f32.mrb[3].mxu0  ;;  %v531_v15 = vpop.f32.mrb[3].mxu1 }
 0x20b   : > { %v461_v16 = vadd.f32 %v460_v14, %v1467_v9  ;;  %v532_v17 = vadd.f32 %v531_v15, %v1471_v11 }
 0x20d   : > { %v538_v18 = vcombine.low %v459_v6, %v461_v16  ;;  %v539_v19 = vcombine.low %v530_v7, %v532_v17  ;;  %60 = sbr.rel (!%p58_p0) target bundleno = 7 (0x7), region = 73 }
 0x20f   : > { %v546_v20 = vrot.slane %v538_v18, %v1879_v39  ;;  %v553_v22 = vrot.slane %v539_v19, %v1879_v39 }
 0x211   : > { %v554_v23 = vcombine.low %v546_v20, %v553_v22 }
 0x213   : > { %558 = vst [vmem:[%s557_s30] sm:$0xff] %v554_v23 }
 0x214 LB: > { %v572_v2 = vld [vmem:[%s2184_s2 + $0x8] sm:$0xff]  ;;  %v574_v9 = vld [vmem:[%s2184_s2 + $0x18] sm:$0xff]  ;;  %v571_v12 = vld [vmem:[%s2184_s2] sm:$0xff]  ;;  %v1399_v27 = vmov 0.0   ;;  %s994_s1 = sshll.u32 %s1395_s10, 3  ;;  %s564_s10 = sadd.s32 1, %s1395_s10   ;;  %s1395_s10 = sphi %s1909_s10, %s564_s10   ;;  %v1391_v25 = vphi %v1907_v25, %v2192_v25   ;;  %v1387_v24 = vphi %v1905_v24, %v828_v24  }
 0x215   : > { %v576_v8 = vld [vmem:[%s2184_s2 + $0x28] sm:$0xff]  ;;  %v578_v11 = vld [vmem:[%s2184_s2 + $0x38] sm:$0xff]  ;;  %v575_v26 = vld [vmem:[%s2184_s2 + $0x20] sm:$0xff]  ;;  %699 = vmatprep.mubr.f32.mxu0 %v1399_v27  ;;  %770 = vmatprep.mubr.f32.mxu1 %v1399_v27  ;;  %s569_s3 = scalar_lea.vmem [#allocation2], %s994_s1  ;;  %p561_p1 = scmp.ge.s32.totalorder %s564_s10, 8  }
 0x216   : > { %v1175_v10 = vpack.c.bf16 %v576_v8, %v572_v2  ;;  %v1207_v28 = vpack.c.bf16 %v578_v11, %v574_v9  ;;  %v1177_v29 = vpack.c.bf16 %v575_v26, %v571_v12  ;;  %v573_v30 = vld [vmem:[%s2184_s2 + $0x10] sm:$0xff]  ;;  %v580_v32 = vld [vmem:[%s2184_s2 + $0x48] sm:$0xff]  ;;  %v582_v35 = vld [vmem:[%s2184_s2 + $0x58] sm:$0xff]  ;;  %vm1401_vm0 = vmmov (%p561_p1), 0  }
 0x217   : > { %v577_v31 = vld [vmem:[%s2184_s2 + $0x30] sm:$0xff]  ;;  %v584_v34 = vld [vmem:[%s2184_s2 + $0x68] sm:$0xff]  ;;  %v586_v36 = vld [vmem:[%s2184_s2 + $0x78] sm:$0xff]  ;;  %vm932_vm1 = vcmask (%p561_p1), 1041408   ;;  %vm944_vm2 = vcmask (%p561_p1), 1024  }
 0x218   : > { %1176 = vmatprep.subr.bf16.mxu0 %v1175_v10  ;;  %v1209_v33 = vpack.c.bf16 %v577_v31, %v573_v30  ;;  %1208 = vmatprep.subr.bf16.mxu1 %v1207_v28  ;;  %v1179_v37 = vpack.c.bf16 %v584_v34, %v580_v32  ;;  %v1211_v38 = vpack.c.bf16 %v586_v36, %v582_v35  ;;  %v579_v40 = vld [vmem:[%s2184_s2 + $0x40] sm:$0xff]  ;;  %v581_v42 = vld [vmem:[%s2184_s2 + $0x50] sm:$0xff]  ;;  %v588_v45 = vld [vmem:[%s2184_s2 + $0x88] sm:$0xff] }
 0x219   : > { %1178 = vmatpush1.bf16.msra.mxu0 %v1177_v29  ;;  %v583_v41 = vld [vmem:[%s2184_s2 + $0x60] sm:$0xff]  ;;  %v585_v44 = vld [vmem:[%s2184_s2 + $0x70] sm:$0xff]  ;;  %v592_v46 = vld [vmem:[%s2184_s2 + $0xa8] sm:$0xff] }
 0x21a   : > { %1210 = vmatpush1.bf16.msra.mxu1 %v1209_v33  ;;  %v1181_v43 = vpack.c.bf16 %v583_v41, %v579_v40  ;;  %1180 = vmatprep.subr.bf16.mxu0 %v1179_v37  ;;  %v1213_v47 = vpack.c.bf16 %v585_v44, %v581_v42  ;;  %v1183_v48 = vpack.c.bf16 %v592_v46, %v588_v45  ;;  %v590_v49 = vld [vmem:[%s2184_s2 + $0x98] sm:$0xff]  ;;  %v587_v51 = vld [vmem:[%s2184_s2 + $0x80] sm:$0xff]  ;;  %v589_v54 = vld [vmem:[%s2184_s2 + $0x90] sm:$0xff] }
 0x21b   : > { %1212 = vmatprep.subr.bf16.mxu1 %v1211_v38  ;;  %v594_v50 = vld [vmem:[%s2184_s2 + $0xb8] sm:$0xff]  ;;  %v591_v53 = vld [vmem:[%s2184_s2 + $0xa0] sm:$0xff]  ;;  %v593_v55 = vld [vmem:[%s2184_s2 + $0xb0] sm:$0xff] }
 0x21c   : > { %v1215_v52 = vpack.c.bf16 %v594_v50, %v590_v49  ;;  %v1185_v56 = vpack.c.bf16 %v591_v53, %v587_v51  ;;  %v596_v57 = vld [vmem:[%s2184_s2 + $0xc8] sm:$0xff]  ;;  %v598_v13 = vld [vmem:[%s2184_s2 + $0xd8] sm:$0xff]  ;;  %v1217_v21 = vpack.c.bf16 %v593_v55, %v589_v54  ;;  %v595_v61 = vld [vmem:[%s2184_s2 + $0xc0] sm:$0xff] }
 0x21d   : > { %1182 = vmatpush1.bf16.msra.mxu0 %v1181_v43  ;;  %v600_v58 = vld [vmem:[%s2184_s2 + $0xe8] sm:$0xff]  ;;  %v602_v60 = vld [vmem:[%s2184_s2 + $0xf8] sm:$0xff]  ;;  %v599_v62 = vld [vmem:[%s2184_s2 + $0xe0] sm:$0xff] }
 0x21e   : > { %1214 = vmatpush1.bf16.msra.mxu1 %v1213_v47  ;;  %1184 = vmatprep.subr.bf16.mxu0 %v1183_v48  ;;  %v1187_v59 = vpack.c.bf16 %v600_v58, %v596_v57  ;;  %v1219_v63 = vpack.c.bf16 %v602_v60, %v598_v13  ;;  %v597_v0 = vld [vmem:[%s2184_s2 + $0xd0] sm:$0xff]  ;;  %v604_v3 = vld [vmem:[%s2184_s2 + $0x108] sm:$0xff]  ;;  %v606_v5 = vld [vmem:[%s2184_s2 + $0x118] sm:$0xff]  ;;  %v1189_v7 = vpack.c.bf16 %v599_v62, %v595_v61 }
 0x21f   : > { %1216 = vmatprep.subr.bf16.mxu1 %v1215_v52  ;;  %v601_v1 = vld [vmem:[%s2184_s2 + $0xf0] sm:$0xff]  ;;  %v608_v4 = vld [vmem:[%s2184_s2 + $0x128] sm:$0xff]  ;;  %v610_v6 = vld [vmem:[%s2184_s2 + $0x138] sm:$0xff] }
 0x220   : > { %v1221_v14 = vpack.c.bf16 %v601_v1, %v597_v0  ;;  %v1191_v15 = vpack.c.bf16 %v608_v4, %v604_v3  ;;  %v603_v16 = vld [vmem:[%s2184_s2 + $0x100] sm:$0xff]  ;;  %v605_v18 = vld [vmem:[%s2184_s2 + $0x110] sm:$0xff]  ;;  %v1223_v19 = vpack.c.bf16 %v610_v6, %v606_v5  ;;  %v612_v22 = vld [vmem:[%s2184_s2 + $0x148] sm:$0xff] }
 0x221   : > { %1186 = vmatpush1.bf16.msra.mxu0 %v1185_v56  ;;  %v607_v17 = vld [vmem:[%s2184_s2 + $0x120] sm:$0xff]  ;;  %v609_v20 = vld [vmem:[%s2184_s2 + $0x130] sm:$0xff]  ;;  %v616_v23 = vld [vmem:[%s2184_s2 + $0x168] sm:$0xff] }
 0x222   : > { %1218 = vmatpush1.bf16.msra.mxu1 %v1217_v21  ;;  %1188 = vmatprep.subr.bf16.mxu0 %v1187_v59  ;;  %v614_v2 = vld [vmem:[%s2184_s2 + $0x158] sm:$0xff]  ;;  %v1193_v9 = vpack.c.bf16 %v607_v17, %v603_v16  ;;  %v1225_v10 = vpack.c.bf16 %v609_v20, %v605_v18  ;;  %v1195_v11 = vpack.c.bf16 %v616_v23, %v612_v22  ;;  %v611_v12 = vld [vmem:[%s2184_s2 + $0x140] sm:$0xff]  ;;  %v613_v27 = vld [vmem:[%s2184_s2 + $0x150] sm:$0xff] }
 0x223   : > { %1220 = vmatprep.subr.bf16.mxu1 %v1219_v63  ;;  %v618_v8 = vld [vmem:[%s2184_s2 + $0x178] sm:$0xff]  ;;  %v615_v26 = vld [vmem:[%s2184_s2 + $0x160] sm:$0xff]  ;;  %v617_v29 = vld [vmem:[%s2184_s2 + $0x170] sm:$0xff] }
 0x224   : > { %v1227_v28 = vpack.c.bf16 %v618_v8, %v614_v2  ;;  %v620_v30 = vld [vmem:[%s2184_s2 + $0x188] sm:$0xff]  ;;  %v622_v32 = vld [vmem:[%s2184_s2 + $0x198] sm:$0xff]  ;;  %v1197_v34 = vpack.c.bf16 %v615_v26, %v611_v12  ;;  %v1229_v35 = vpack.c.bf16 %v617_v29, %v613_v27  ;;  %v619_v37 = vld [vmem:[%s2184_s2 + $0x180] sm:$0xff] }
 0x225   : > { %1190 = vmatpush1.bf16.msra.mxu0 %v1189_v7  ;;  %v624_v31 = vld [vmem:[%s2184_s2 + $0x1a8] sm:$0xff]  ;;  %v626_v33 = vld [vmem:[%s2184_s2 + $0x1b8] sm:$0xff]  ;;  %v623_v38 = vld [vmem:[%s2184_s2 + $0x1a0] sm:$0xff] }
 0x226   : > { %1222 = vmatpush1.bf16.msra.mxu1 %v1221_v14  ;;  %1192 = vmatprep.subr.bf16.mxu0 %v1191_v15  ;;  %v1199_v36 = vpack.c.bf16 %v624_v31, %v620_v30  ;;  %v621_v40 = vld [vmem:[%s2184_s2 + $0x190] sm:$0xff]  ;;  %v1231_v41 = vpack.c.bf16 %v626_v33, %v622_v32  ;;  %v628_v43 = vld [vmem:[%s2184_s2 + $0x1c8] sm:$0xff]  ;;  %v630_v45 = vld [vmem:[%s2184_s2 + $0x1d8] sm:$0xff]  ;;  %v1201_v47 = vpack.c.bf16 %v623_v38, %v619_v37 }
 0x227   : > { %1224 = vmatprep.subr.bf16.mxu1 %v1223_v19  ;;  %v625_v42 = vld [vmem:[%s2184_s2 + $0x1b0] sm:$0xff]  ;;  %v632_v44 = vld [vmem:[%s2184_s2 + $0x1e8] sm:$0xff]  ;;  %v634_v46 = vld [vmem:[%s2184_s2 + $0x1f8] sm:$0xff] }
 0x228   : > { %v1233_v48 = vpack.c.bf16 %v625_v42, %v621_v40  ;;  %v1203_v49 = vpack.c.bf16 %v632_v44, %v628_v43  ;;  %v627_v50 = vld [vmem:[%s2184_s2 + $0x1c0] sm:$0xff]  ;;  %v1235_v52 = vpack.c.bf16 %v634_v46, %v630_v45  ;;  %v629_v53 = vld [vmem:[%s2184_s2 + $0x1d0] sm:$0xff]  ;;  %v832_v26 = vld [vmem:[%s2187_s5 + $0x8] sm:$0xff] (%p561_p1) }
 0x229   : > { %1194 = vmatpush1.bf16.msra.mxu0 %v1193_v9  ;;  %v631_v51 = vld [vmem:[%s2184_s2 + $0x1e0] sm:$0xff]  ;;  %v633_v54 = vld [vmem:[%s2184_s2 + $0x1f0] sm:$0xff]  ;;  %v834_v30 = vld [vmem:[%s2187_s5 + $0x18] sm:$0xff] (%p561_p1) }
 0x22a   : > { %1226 = vmatpush1.bf16.msra.mxu1 %v1225_v10  ;;  %1196 = vmatprep.subr.bf16.mxu0 %v1195_v11  ;;  %v1205_v55 = vpack.c.bf16 %v631_v51, %v627_v50  ;;  %v1237_v56 = vpack.c.bf16 %v633_v54, %v629_v53  ;;  %v570_v63 = vld [vmem:[%s569_s3] sm:$0xff]  ;;  %v833_v27 = vld [vmem:[%s2187_s5 + $0x10] sm:$0xff] (%p561_p1)  ;;  %v836_v32 = vld [vmem:[%s2187_s5 + $0x28] sm:$0xff] (%p561_p1) }
 0x22b   : > { %1228 = vmatprep.subr.bf16.mxu1 %v1227_v28  ;;  %v831_v12 = vld [vmem:[%s2187_s5] sm:$0xff] (%p561_p1)  ;;  %v1400_v28 = vmov (%p561_p1), 0.0|0.0   ;;  %v840_v38 = vld [vmem:[%s2187_s5 + $0x48] sm:$0xff] (%p561_p1)  ;;  %v842_v42 = vld [vmem:[%s2187_s5 + $0x58] sm:$0xff] (%p561_p1) }
 0x22c   :  { %v1240_v29 = vpack.c.bf16 (%p561_p1), %v832_v26, %v831_v12  ;;  %v835_v31 = vld [vmem:[%s2187_s5 + $0x20] sm:$0xff] (%p561_p1)  ;;  %v844_v45 = vld [vmem:[%s2187_s5 + $0x68] sm:$0xff] (%p561_p1) }
 0x22d   : > { %1198 = vmatpush1.bf16.msra.mxu0 %v1197_v34  ;;  %v1246_v33 = vpack.c.bf16 (%p561_p1), %v836_v32, %v835_v31  ;;  %v837_v34 = vld [vmem:[%s2187_s5 + $0x30] sm:$0xff] (%p561_p1)  ;;  %v839_v37 = vld [vmem:[%s2187_s5 + $0x40] sm:$0xff] (%p561_p1) }
 0x22e   : > { %1230 = vmatpush1.bf16.msra.mxu1 %v1229_v35  ;;  %1200 = vmatprep.subr.bf16.mxu0 %v1199_v36  ;;  %v838_v35 = vld [vmem:[%s2187_s5 + $0x38] sm:$0xff] (%p561_p1)  ;;  %v1252_v40 = vpack.c.bf16 (%p561_p1), %v840_v38, %v839_v37  ;;  %v843_v44 = vld [vmem:[%s2187_s5 + $0x60] sm:$0xff] (%p561_p1) }
 0x22f   : > { %1232 = vmatprep.subr.bf16.mxu1 %v1231_v41  ;;  %v1249_v36 = vpack.c.bf16 (%p561_p1), %v838_v35, %v837_v34  ;;  %v841_v41 = vld [vmem:[%s2187_s5 + $0x50] sm:$0xff] (%p561_p1)  ;;  %v1258_v46 = vpack.c.bf16 (%p561_p1), %v844_v45, %v843_v44  ;;  %v989_v50 = vld [vmem:[%s2188_s6] ss:$0 sm:$0xff] (%p561_p1) }
 0x230   :  { %v1255_v43 = vpack.c.bf16 (%p561_p1), %v842_v42, %v841_v41 }
 0x231   : > { %1202 = vmatpush1.bf16.msra.mxu0 %v1201_v47  ;;  %v845_v47 = vld [vmem:[%s2187_s5 + $0x70] sm:$0xff] (%p561_p1) }
 0x232   : > { %1234 = vmatpush1.bf16.msra.mxu1 %v1233_v48  ;;  %1204 = vmatprep.subr.bf16.mxu0 %v1203_v49  ;;  %v846_v48 = vld [vmem:[%s2187_s5 + $0x78] sm:$0xff] (%p561_p1) }
 0x233   : > { %1236 = vmatprep.subr.bf16.mxu1 %v1235_v52  ;;  %v1261_v49 = vpack.c.bf16 (%p561_p1), %v846_v48, %v845_v47  ;;  %v990_v52 = vld [vmem:[%s2189_s7] ss:$0 sm:$0xff] (%p561_p1) }
 0x235   : > { %1206 = vmatpush1.bf16.msra.mxu0 %v1205_v55 }
 0x236   : > { %1238 = vmatpush1.bf16.msra.mxu1 %v1237_v56  ;;  %1239 = vmatprep.subr.bf16.mxu0 (%p561_p1), %v1400_v28 }
 0x238   : > { %700 = vmatmul.mubr.f32.vlgmr.msra.gmra.mrb[0].mxu0 %v1391_v25 }
 0x239   : > { %771 = vmatmul.mubr.f32.vlgmr.msra.gmra.mrb[0].mxu1 %v1391_v25  ;;  %1241 = vmatpush3.bf16.msra.mxu0 (%p561_p1), %v1240_v29 }
 0x23a   :  { %1242 = vmatprep.subr.bf16.mxu0 (%p561_p1), %v1400_v28 }
 0x30b   : > { %v701_v57 = vpop.f32.mrb[0].mxu0 }
 0x30c   : > { %v772_v58 = vpop.f32.mrb[0].mxu1  ;;  %v703_v13 = vpop.f32.mrb[1].mxu0 }
 0x30d   : > { %v781_v21 = vcombine.low %v701_v57, %v703_v13  ;;  %v774_v59 = vpop.f32.mrb[1].mxu1  ;;  %v991_v57 = vld [vmem:[#allocation3] ss:$0 sm:$0xff] (%p561_p1) }
 0x30e   : > { %v782_v60 = vcombine.low %v772_v58, %v774_v59 }
 0x30f   : > { %v789_v61 = vrot.slane %v781_v21, %v1879_v39 }
 0x310   : > { %v796_v62 = vrot.slane %v782_v60, %v1879_v39  ;;  %v1402_v39 = vmov (%p561_p1), 0.0  }
 0x311   :  { %1044 = vmatprep.mubr.msk.f32.mxu0 (%p561_p1), %vm1401_vm0, %v1402_v39 }
 0x312   : > { %v797_v0 = vcombine.low %v789_v61, %v796_v62 }
 0x314   : > { %v799_v1 = vadd.f32 %v797_v0, %v570_v63 }
 0x316   : > { %v986_v3 = vmul.f32 -1.442695, %v799_v1  ;;  %v807_v4 = vrot.slane %v799_v1, 2  ;;  %v818_v25 = vrot.slane %v799_v1, 6  ;;  %v815_v14 = vrot.slane %v799_v1, 4 }
 0x318   : > { %1333 = vpow2.f32 %v986_v3  ;;  %v987_v5 = vmul.f32 -1.442695, %v807_v4  ;;  %v988_v6 = vmul.f32 -1.442695, %v818_v25 }
 0x31a   : > { %1335 = vpow2.f32 %v987_v5 }
 0x31b   : > { %1337 = vpow2.f32 %v988_v6 }
 0x322   : > { %v1334_v7 = vpop.eup %1333 }
 0x323   : > { %v803_v15 = vadd.f32 1.0, %v1334_v7 }
 0x324   : > { %v1336_v16 = vpop.eup %1335 }
 0x325   : > { %1339 = vrcp.f32 %v803_v15  ;;  %v812_v17 = vadd.f32 1.0, %v1336_v16  ;;  %v1338_v18 = vpop.eup %1337 }
 0x326   : > { %1341 = vtanh.f32 %v815_v14  ;;  %v823_v23 = vadd.f32 1.0, %v1338_v18 }
 0x327   : > { %1343 = vrcp.f32 %v812_v17 }
 0x328   : > { %1345 = vrcp.f32 %v823_v23 }
 0x32f   : > { %v1340_v19 = vpop.eup %1339 }
 0x330   : > { %v1342_v20 = vpop.eup %1341 }
 0x331   : > { %v1344_v22 = vpop.eup %1343  ;;  %v827_v8 = vmul.f32 %v1342_v20, %v1340_v19 }
 0x332   : > { %v826_v2 = vmul.f32 %v1387_v24, %v1344_v22  ;;  %v1346_v9 = vpop.eup %1345 }
 0x334   : > { %v828_v24 = vadd.f32 %v827_v8, %v826_v2  }
 0x336   : > { %1347 = vtanh.f32 %v828_v24  ;;  %v1243_v24 = vpack.c.bf16 (%p561_p1), %v834_v30, %v833_v27 }
 0x338   :  { %1244 = vmatpush3.bf16.msra.mxu0 (%p561_p1), %v1243_v24 }
 0x339   :  { %1245 = vmatprep.subr.bf16.mxu0 (%p561_p1), %v1400_v28 }
 0x33c   :  { %1247 = vmatpush3.bf16.msra.mxu0 (%p561_p1), %v1246_v33 }
 0x33d   :  { %563 = sbr.rel (!%p561_p1) target bundleno = 532 (0x214), region = 84  ;;  %1248 = vmatprep.subr.bf16.mxu0 (%p561_p1), %v1400_v28 }
 0x340   : > { %v1348_v10 = vpop.eup %1347  ;;  %1250 = vmatpush3.bf16.msra.mxu0 (%p561_p1), %v1249_v36 }
 0x341   : > { %v830_v11 = vmul.f32 %v1348_v10, %v1346_v9   ;;  %1251 = vmatprep.subr.bf16.mxu0 (%p561_p1), %v1400_v28 }
 0x343   : > { %v2192_v25 = vmov %v830_v11 }
 0x344   :  { %1253 = vmatpush3.bf16.msra.mxu0 %v1252_v40 }
 0x345   :  { %1254 = vmatprep.subr.bf16.mxu0 %v1400_v28 }
 0x348   :  { %1256 = vmatpush3.bf16.msra.mxu0 %v1255_v43 }
 0x349   :  { %1257 = vmatprep.subr.bf16.mxu0 %v1400_v28 }
 0x34c   :  { %1259 = vmatpush3.bf16.msra.mxu0 %v1258_v46 }
 0x34d   :  { %1260 = vmatprep.subr.bf16.mxu0 %v1400_v28 }
 0x350   :  { %1262 = vmatpush3.bf16.msra.mxu0 %v1261_v49 }
 0x353   :  { %1045 = vmatmul.mubr.f32.vlgmr.msra.gmra.mrb[0].mxu0 %v830_v11 }
 0x426   :  { %v920_v51 = vpop.f32.mrb[0].mxu0 }
 0x427   :  { %v921_v53 = vadd.f32 %v989_v50, %v920_v51  ;;  %v1046_v54 = vpop.f32.mrb[1].mxu0 }
 0x429   :  { %v931_v55 = vmul.f32 %v990_v52, %v921_v53 }
 0x42b   :  { %v933_v56 = vsel %vm932_vm1, %v931_v55, 0.0 }
 0x42c   :  { %934 = vadd.xlane.f32.xlu0 %v933_v56 }
 0x4b9   :  { %v935_v58 = vpop.xlane.xlu0 %934 }
 0x4ba   :  { %v943_v13 = vadd.f32 %v991_v57, %v935_v58 }
 0x4bc   :  { %945 = vst.msk [vmem:[%s2191_s9] sm:$0x3] %vm944_vm2, %v943_v13 }

</bundles_post_ra>
